<compile_context>
chip_gen: v7x
topology: tpu7x:2x2x1
jax: 0.10.0
libtpu: 0.0.40
codegen_flags: <defaults>
</compile_context>

<pallas_src>
import functools

import jax
import jax.numpy as jnp
from jax.experimental import pallas as pl
from jax.experimental.pallas import tpu as pltpu


LATENT_DIM = 2000  # fixed by the PyTorch module


def _round_up(v, m):
    return ((v + m - 1) // m) * m


# ---------------------------------------------------------------------------
# Kernels
# ---------------------------------------------------------------------------
def _linear_kernel(x_ref, w_ref, b_ref, o_ref):
    """Single-K-block linear: o = x @ w + b, trimmed to the output width."""
    acc = jnp.dot(x_ref[...], w_ref[...], preferred_element_type=jnp.float32)
    acc = acc + b_ref[...].astype(jnp.float32)
    ow = o_ref.shape[-1]                      # may be < w tile width (lane pad)
    o_ref[...] = acc[:, :ow].astype(o_ref.dtype)


def _linear_kernel_ktiled(x_ref, w_ref, b_ref, o_ref, acc_ref):
    """K-tiled linear with an f32 VMEM accumulator (grid axis 2 = reduction)."""
    k = pl.program_id(2)

    @pl.when(k == 0)
    def _():
        acc_ref[...] = jnp.zeros_like(acc_ref)

    acc_ref[...] += jnp.dot(x_ref[...], w_ref[...],
                            preferred_element_type=jnp.float32)

    @pl.when(k == pl.num_programs(2) - 1)
    def _():
        res = acc_ref[...] + b_ref[...].astype(jnp.float32)
        ow = o_ref.shape[-1]
        o_ref[...] = res[:, :ow].astype(o_ref.dtype)


# ---------------------------------------------------------------------------
# Generation-aware planning
# ---------------------------------------------------------------------------
@functools.lru_cache(maxsize=1)
def _tpu_vmem_and_cores():
    """(vmem_capacity_bytes, two_tensorcores_per_chip) with a safe fallback."""
    vmem_cap = 64 << 20          # conservative default (v7x per-TC VMEM)
    two_tc = False
    try:
        info = pltpu.get_tpu_info()
        vmem_cap = int(getattr(info, "vmem_capacity_bytes", vmem_cap))
        # v7x exposes ~64 MiB VMEM per TensorCore and has 2 TCs per chip;
        # v5e / v6e expose 128 MiB and have a single TC.
        two_tc = vmem_cap <= (96 << 20)
    except Exception:            # e.g. interpret mode / query unavailable
        pass
    return vmem_cap, two_tc


def _vmem_need(tm, tk, tn, itemsize, out_itemsize):
    # double-buffered x / w / b tiles + double-buffered out tile + f32 acc
    return (2 * (tm * tk + tk * tn + tn) * itemsize
            + 2 * tm * tn * out_itemsize
            + tm * tn * 4)


def _plan_tiles(M, K, Np, itemsize, out_itemsize, *, two_tc, vmem_cap, bf16):
    budget = max(vmem_cap // 2, 16 << 20)

    # M tile: 512 / 256 for large batches, sublane-rounded for tiny batches.
    if M >= 512:
        tm = 512
    elif M >= 256:
        tm = 256
    else:
        tm = _round_up(max(M, 1), 16 if bf16 else 8)

    # N tile: 2 disjoint weight halves on a 2-TC chip (each TC streams its half
    # of W exactly once); otherwise a single full-width lane-dense block.
    if two_tc and Np >= 256 and Np % 256 == 0:
        tn = Np // 2
    else:
        tn = Np
    # Shrink tn only if even a minimal K tile would not fit the budget.
    while (tn > 512 and tn % 256 == 0
           and _vmem_need(tm, 128, tn, itemsize, out_itemsize) > budget):
        tn //= 2

    # K tile: full K unless the working set exceeds the budget.
    tk = K
    if _vmem_need(tm, K, tn, itemsize, out_itemsize) > budget:
        tk = 512
        while tk > 128 and _vmem_need(tm, tk, tn, itemsize, out_itemsize) > budget:
            tk //= 2

    return tm, tn, tk


# ---------------------------------------------------------------------------
# Forward
# ---------------------------------------------------------------------------
@functools.partial(jax.jit, static_argnames=("latent_dim", "compute_dtype"))
def encoder_forward(x, w, b, *, latent_dim=LATENT_DIM, compute_dtype=None):
    """Pallas equivalent of Encoder.forward.

    x: any shape (..., input_dim); flattened to (-1, input_dim) like
       `input_data.view(-1, input_dim)`.
    w: (input_dim, Np) weight (transpose of PyTorch's (out, in)); Np may be
       lane-padded (extra columns zero) -- padding enables the v7x 2-TC split.
    b: (1, Np) or (Np,) bias, padded the same way.
    compute_dtype: e.g. jnp.bfloat16 on v6e/v7x to halve weight HBM traffic;
       accumulation and bias add stay f32 (results then differ slightly from
       an f32 reference).
    """
    K, Np = w.shape
    if Np < latent_dim:
        raise ValueError(f"weight has {Np} output columns < latent_dim={latent_dim}")
    b = b.reshape(1, Np)

    out_dtype = x.dtype
    x2d = x.reshape(-1, K)
    M = x2d.shape[0]

    if compute_dtype is not None:
        x2d = x2d.astype(compute_dtype)
        w = w.astype(compute_dtype)

    itemsize = jnp.dtype(x2d.dtype).itemsize
    out_itemsize = jnp.dtype(out_dtype).itemsize
    vmem_cap, two_tc = _tpu_vmem_and_cores()
    bf16 = (compute_dtype is not None
            and jnp.dtype(compute_dtype) == jnp.dtype(jnp.bfloat16))

    tm, tn, tk = _plan_tiles(M, K, Np, itemsize, out_itemsize,
                             two_tc=two_tc, vmem_cap=vmem_cap, bf16=bf16)

    # Row padding so M divides the M tile.
    Mp = _round_up(M, tm)
    if Mp != M:
        x2d = jnp.zeros((Mp, K), x2d.dtype).at[:M].set(x2d)

    # K padding only on the (rare) K-tiled generality path.
    Kp = K
    if tk != K:
        Kp = _round_up(K, tk)
        if Kp != K:
            x2d = jnp.zeros((Mp, Kp), x2d.dtype).at[:, :K].set(x2d)
            w = jnp.zeros((Kp, Np), w.dtype).at[:K].set(w)

    nN = Np // tn
    nM = Mp // tm
    nK = Kp // tk

    # Single N block -> write an unpadded (Mp, latent_dim) slab directly
    # (column trim happens in-kernel), so no post-kernel column-slice copy.
    # Two N blocks (v7x) -> padded slab, sliced once afterwards.
    out_w = latent_dim if nN == 1 else tn
    out_N = latent_dim if nN == 1 else Np

    need = _vmem_need(tm, tk, tn, itemsize, out_itemsize)
    vmem_limit = int(min(max(need + (8 << 20), 32 << 20), int(vmem_cap * 0.9)))

    cost = pl.CostEstimate(
        flops=2 * Mp * Kp * Np,
        transcendentals=0,
        bytes_accessed=int(itemsize * (Mp * Kp * nN + Kp * Np + Np)
                           + out_itemsize * Mp * out_N),
    )

    if nK == 1:
        grid = (nN, nM)          # N outer, M inner: each weight tile DMA'd once
        in_specs = [
            pl.BlockSpec((tm, Kp), lambda j, i: (i, 0)),   # activations (re-streamed)
            pl.BlockSpec((Kp, tn), lambda j, i: (0, j)),   # weights (once per N block)
            pl.BlockSpec((1, tn), lambda j, i: (0, j)),    # bias
        ]
        out_specs = pl.BlockSpec((tm, out_w), lambda j, i: (i, j))
        scratch_shapes = []
        kernel = _linear_kernel
        dims = ("parallel", "parallel")
    else:
        grid = (nN, nM, nK)
        in_specs = [
            pl.BlockSpec((tm, tk), lambda j, i, k: (i, k)),
            pl.BlockSpec((tk, tn), lambda j, i, k: (k, j)),
            pl.BlockSpec((1, tn), lambda j, i, k: (0, j)),
        ]
        out_specs = pl.BlockSpec((tm, out_w), lambda j, i, k: (i, j))
        scratch_shapes = [pltpu.VMEM((tm, tn), jnp.float32)]
        kernel = _linear_kernel_ktiled
        dims = ("parallel", "parallel", "arbitrary")

    out_p = pl.pallas_call(
        kernel,
        out_shape=jax.ShapeDtypeStruct((Mp, out_N), out_dtype),
        grid_spec=pltpu.PrefetchScalarGridSpec(
            num_scalar_prefetch=0,
            grid=grid,
            in_specs=in_specs,
            out_specs=out_specs,
            scratch_shapes=scratch_shapes,
        ),
        compiler_params=pltpu.CompilerParams(
            dimension_semantics=dims,
            vmem_limit_bytes=vmem_limit,
        ),
        cost_estimate=cost,
    )(x2d, w, b)

    # Only slice away what was actually padded.
    if out_N != latent_dim:
        return out_p[:M, :latent_dim]
    if Mp != M:
        return out_p[:M]
    return out_p


# ---------------------------------------------------------------------------
# Parameter init (mirrors torch.nn.Linear default: uniform +/- 1/sqrt(in))
# ---------------------------------------------------------------------------
def init_encoder_params(key, input_dim, latent_dim=LATENT_DIM, dtype=jnp.float32):
    """Weights stored as (in, out) -- transpose of PyTorch's (out, in) -- and
    zero-padded ONCE here to the next multiple of 128 lanes (this both keeps
    the weight loads unmasked and enables the 2-TensorCore split on v7x)."""
    kw, kb = jax.random.split(key)
    bound = 1.0 / (input_dim ** 0.5)
    n_pad = _round_up(latent_dim, 128)
    w = jnp.zeros((input_dim, n_pad), dtype).at[:, :latent_dim].set(
        jax.random.uniform(kw, (input_dim, latent_dim), dtype, -bound, bound))
    b = jnp.zeros((1, n_pad), dtype).at[:, :latent_dim].set(
        jax.random.uniform(kb, (1, latent_dim), dtype, -bound, bound))
    return w, b


if __name__ == "__main__":
    key = jax.random.PRNGKey(0)
    k_x, k_p = jax.random.split(key)

    input_dim = 64
    # Example input: (2, 4, 64); forward flattens to (8, 64) like view(-1, input_dim).
    x = jax.random.normal(k_x, (2, 4, input_dim), jnp.float32)
    w, b = init_encoder_params(k_p, input_dim)

    out = jax.block_until_ready(encoder_forward(x, w, b))

    # Sanity check against plain-JAX reference (unpadded columns only).
    ref = x.reshape(-1, input_dim) @ w[:, :LATENT_DIM] + b[0, :LATENT_DIM]
    assert out.shape == (8, LATENT_DIM), out.shape
    assert jnp.allclose(out, ref, atol=1e-4, rtol=1e-4), float(
        jnp.max(jnp.abs(out - ref)))

    print("KERNEL_OK")
</pallas_src>

<mosaic_0001>
module attributes {stable_mosaic.version = 11 : i64} {
  func.func @_linear_kernel(%arg0: i32, %arg1: i32, %arg2: memref<8x64xf32, #tpu.memory_space<vmem>>, %arg3: memref<64x2048xf32, #tpu.memory_space<vmem>>, %arg4: memref<1x2048xf32, #tpu.memory_space<vmem>>, %arg5: memref<8x2000xf32, #tpu.memory_space<vmem>>) attributes {dimension_semantics = [#tpu.dimension_semantics<parallel>, #tpu.dimension_semantics<parallel>], iteration_bounds = array<i64: 1, 1>, scalar_prefetch = 0 : i64, scratch_operands = 0 : i64, tpu.core_type = #tpu.core_type<tc>, window_params = [{transform_indices = @transform_0, window_bounds = array<i64: 8, 64>}, {transform_indices = @transform_1, window_bounds = array<i64: 64, 2048>}, {transform_indices = @transform_2, window_bounds = array<i64: 1, 2048>}, {transform_indices = @transform_3, window_bounds = array<i64: 8, 2000>}]} {
    %c0 = arith.constant 0 : index
    %c0_0 = arith.constant 0 : index
    %0 = vector.load %arg2[%c0, %c0_0] : memref<8x64xf32, #tpu.memory_space<vmem>>, vector<8x64xf32>
    %c0_1 = arith.constant 0 : index
    %c0_2 = arith.constant 0 : index
    %1 = vector.load %arg3[%c0_1, %c0_2] : memref<64x2048xf32, #tpu.memory_space<vmem>>, vector<64x2048xf32>
    %cst = arith.constant dense<0.000000e+00> : vector<8x2048xf32>
    %2 = tpu.matmul %0, %1, %cst {dimension_numbers = #tpu.dot_dimension_numbers<[1], [0], [0], [1], [0, 0, 1, 1], [], []>} : vector<8x64xf32>, vector<64x2048xf32>, vector<8x2048xf32> -> vector<8x2048xf32>
    %c0_3 = arith.constant 0 : index
    %c0_4 = arith.constant 0 : index
    %3 = vector.load %arg4[%c0_3, %c0_4] : memref<1x2048xf32, #tpu.memory_space<vmem>>, vector<1x2048xf32>
    %4 = vector.broadcast %3 : vector<1x2048xf32> to vector<8x2048xf32>
    %5 = arith.addf %2, %4 : vector<8x2048xf32>
    %6 = vector.extract_strided_slice %5 {offsets = [0, 0], sizes = [8, 2000], strides = [1, 1]} : vector<8x2048xf32> to vector<8x2000xf32>
    %c0_5 = arith.constant 0 : index
    %c0_6 = arith.constant 0 : index
    %7 = vector.load %arg5[%c0_5, %c0_6] : memref<8x2000xf32, #tpu.memory_space<vmem>>, vector<8x2000xf32>
    tpu.vector_store %arg5[%c0_5, %c0_6], %6 {strides = array<i32>} : memref<8x2000xf32, #tpu.memory_space<vmem>>, vector<8x2000xf32>,
    return
  }
  func.func @transform_0(%arg0: i32, %arg1: i32) -> (i32, i32) {
    %c0_i32 = arith.constant 0 : i32
    %c0_i32_0 = arith.constant 0 : i32
    return %arg1, %c0_i32 : i32, i32
  }
  func.func @transform_1(%arg0: i32, %arg1: i32) -> (i32, i32) {
    %c0_i32 = arith.constant 0 : i32
    %c0_i32_0 = arith.constant 0 : i32
    return %c0_i32, %arg0 : i32, i32
  }
  func.func @transform_2(%arg0: i32, %arg1: i32) -> (i32, i32) {
    %c0_i32 = arith.constant 0 : i32
    %c0_i32_0 = arith.constant 0 : i32
    return %c0_i32, %arg0 : i32, i32
  }
  func.func @transform_3(%arg0: i32, %arg1: i32) -> (i32, i32) {
    %c0_i32 = arith.constant 0 : i32
    return %arg1, %arg0 : i32, i32
  }
}

</mosaic_0001>

<bundles_post_ra>
// kernel: encoder_forward.1
= control target key start
LH: loop header
LB: loop body
LE: loop exit
PB: predicated region body
PF: predicated region fallthrough
CT: control target
= control target key end

     0   :  { %8 = vsyncpa [#allocation3], 0  ;;  %s1218_s0 = inlined_call_operand.hbm [shape: f32[8,64], index: 0, kind: input, shape index: {}]   ;;  %s1219_s1 = inlined_call_operand.hbm [shape: f32[64,2048], index: 1, kind: input, shape index: {}]   ;;  %s1220_s2 = inlined_call_operand.hbm [shape: f32[1,2048], index: 2, kind: input, shape index: {}]   ;;  %s1221_s3 = inlined_call_operand.hbm [shape: f32[8,2000], index: 3, kind: output, shape index: {}]  }
   0x1   :  { %9 = vsyncpa [#allocation6], 0 }
   0x2   :  { %10 = vsyncpa [#allocation4], 0  ;;  %s1107_s12 = smov [#allocation5]   ;;  %s1013_s16 = scalar_lea.hbm %s1219_s1, 16384 }
   0x3   :  { %s26_s13 = sshll.u32 %s1107_s12, 4  ;;  %p1014_p0 = scmp.ne.s32.totalorder %s1219_s1, %s1013_s16  ;;  %s27_s13 = int_to_ptr.vmem [resolvable:$true] %s26_s13 }
   0x4   :  { %p1017_p1 = scmp.lt.u32.totalorder %s1013_s16, %s1219_s1 }
   0x6   :  { %p1019_p2 = pnand %p1017_p1, %p1014_p0 }
   0x8   :  { %1022 = shalt.err (!%p1019_p2)
}
   0x9   :  { %s1023_s21 = scalar_lea.vmem %s27_s13, 16384  ;;  %p1028_p4 = scmp.lt.s32.totalorder %s27_s13, %s27_s13 }
   0xa   :  { %p1024_p3 = scmp.ne.s32.totalorder %s27_s13, %s1023_s21  ;;  %p1029_p5 = scmp.lt.s32.totalorder %s1023_s21, %s1023_s21 }
   0xc   :  { %p1030_p6 = por %p1029_p5, %p1028_p4 }
   0xe   :  { %p1031_p7 = pnand %p1030_p6, %p1024_p3 }
  0x10   :  { %1034 = shalt.err (!%p1031_p7)
}
  0x11   :  { %s1108_s22 = smov 2048   ;;  %s1109_s23 = smov 128  }
  0x12   :  { %32 = dma.hbm_to_vmem [thread:$0]  %s1219_s1, 16384, %s27_s13, [#allocation6], %s1108_s22, %s1108_s22, %s1109_s23  }
  0x13   :  { %s1110_s26 = smov [#allocation2]   ;;  %s1111_s28 = smov [#allocation7]  }
  0x14   :  { %s17_s27 = sshll.u32 %s1110_s26, 4  ;;  %s39_s29 = sshll.u32 %s1111_s28, 4  ;;  %s18_s27 = int_to_ptr.vmem [resolvable:$true] %s17_s27  ;;  %s40_s29 = int_to_ptr.vmem [resolvable:$true] %s39_s29 }
  0x15   :  { %s1035_s5 = scalar_lea.hbm %s1218_s0, 128 }
  0x16   :  { %p1036_p8 = scmp.ne.s32.totalorder %s1218_s0, %s1035_s5  ;;  %p1039_p9 = scmp.lt.u32.totalorder %s1035_s5, %s1218_s0 }
  0x18   :  { %p1041_p10 = pnand %p1039_p9, %p1036_p8 }
  0x1a   :  { %1044 = shalt.err (!%p1041_p10)
}
  0x1b   :  { %s1045_s1 = scalar_lea.vmem %s18_s27, 128  ;;  %p1050_p12 = scmp.lt.s32.totalorder %s18_s27, %s18_s27 }
  0x1c   :  { %p1046_p11 = scmp.ne.s32.totalorder %s18_s27, %s1045_s1  ;;  %p1051_p13 = scmp.lt.s32.totalorder %s1045_s1, %s1045_s1 }
  0x1e   :  { %p1052_p0 = por %p1051_p13, %p1050_p12 }
  0x20   :  { %p1053_p1 = pnand %p1052_p0, %p1046_p11 }
  0x22   :  { %1056 = shalt.err (!%p1053_p1)
}
  0x23   :  { %20 = dma.hbm_to_vmem [thread:$0]  %s1218_s0, 128, %s18_s27, [#allocation3]  }
  0x24   :  { %s1057_s14 = scalar_lea.hbm %s1220_s2, 256 }
  0x25   :  { %p1058_p2 = scmp.ne.s32.totalorder %s1220_s2, %s1057_s14  ;;  %p1061_p3 = scmp.lt.u32.totalorder %s1057_s14, %s1220_s2 }
  0x27   :  { %p1063_p4 = pnand %p1061_p3, %p1058_p2 }
  0x29   :  { %1066 = shalt.err (!%p1063_p4)
}
  0x2a   :  { %s1067_s19 = scalar_lea.vmem %s40_s29, 256  ;;  %p1072_p6 = scmp.lt.s32.totalorder %s40_s29, %s40_s29 }
  0x2b   :  { %p1068_p5 = scmp.ne.s32.totalorder %s40_s29, %s1067_s19  ;;  %p1073_p7 = scmp.lt.s32.totalorder %s1067_s19, %s1067_s19 }
  0x2d   :  { %p1074_p8 = por %p1073_p7, %p1072_p6 }
  0x2f   :  { %p1075_p9 = pnand %p1074_p8, %p1068_p5 }
  0x31   :  { %1078 = shalt.err (!%p1075_p9)
}
  0x32   :  { %42 = dma.hbm_to_vmem [thread:$0]  %s1220_s2, 256, %s40_s29, [#allocation6]  }
  0x33   :  { %1101 = dma.done.wait [#allocation3], 128  }
  0x34   :  { %1102 = vsyncadd [#allocation3], 4294967168 }
  0x35   :  { %1103 = dma.done.wait [#allocation6], 16640  }
  0x36   :  { %1104 = vsyncadd [#allocation6], 4294950656  ;;  %v1112_v0 = vmov 0.0   ;;  %v54_v1 = vld [vmem:[#allocation5 + $0x8] sm:$0xff]  ;;  %v56_v3 = vld [vmem:[#allocation5 + $0x18] sm:$0xff]  ;;  %vm265_vm0 = vcmask 523264  }
  0x37   :  { %333 = vmatprep.mubr.f32.mxu0 %v1112_v0  ;;  %404 = vmatprep.mubr.f32.mxu1 %v1112_v0  ;;  %v70_v2 = vld [vmem:[#allocation5 + $0x88] sm:$0xff]  ;;  %v72_v5 = vld [vmem:[#allocation5 + $0x98] sm:$0xff]  ;;  %v53_v6 = vld [vmem:[#allocation5] sm:$0xff]  ;;  %s1113_s2 = smov [#allocation8]   ;;  %vm852_vm1 = vcmask 654336  }
  0x38   :  { %v878_v4 = vpack.c.bf16 %v70_v2, %v54_v1  ;;  %v69_v7 = vld [vmem:[#allocation5 + $0x80] sm:$0xff]  ;;  %v894_v8 = vpack.c.bf16 %v72_v5, %v56_v3  ;;  %v55_v10 = vld [vmem:[#allocation5 + $0x10] sm:$0xff]  ;;  %v86_v12 = vld [vmem:[#allocation5 + $0x108] sm:$0xff]  ;;  %s860_s21 = sshll.u32 %s1113_s2, 4  ;;  %s861_s21 = int_to_ptr.vmem [resolvable:$true] %s860_s21 }
  0x39   :  { %v880_v9 = vpack.c.bf16 %v69_v7, %v53_v6  ;;  %v71_v11 = vld [vmem:[#allocation5 + $0x90] sm:$0xff]  ;;  %v102_v14 = vld [vmem:[#allocation5 + $0x188] sm:$0xff]  ;;  %v88_v15 = vld [vmem:[#allocation5 + $0x118] sm:$0xff]  ;;  %s1079_s22 = scalar_lea.vmem %s861_s21, 2048  ;;  %p1084_p11 = scmp.lt.s32.totalorder %s861_s21, %s861_s21 }
  0x3a   :  { %879 = vmatprep.subr.bf16.mxu0 %v878_v4  ;;  %v896_v13 = vpack.c.bf16 %v71_v11, %v55_v10  ;;  %v104_v16 = vld [vmem:[#allocation5 + $0x198] sm:$0xff]  ;;  %895 = vmatprep.subr.bf16.mxu1 %v894_v8  ;;  %v882_v17 = vpack.c.bf16 %v102_v14, %v86_v12  ;;  %v85_v19 = vld [vmem:[#allocation5 + $0x100] sm:$0xff]  ;;  %v87_v21 = vld [vmem:[#allocation5 + $0x110] sm:$0xff]  ;;  %p1080_p10 = scmp.ne.s32.totalorder %s861_s21, %s1079_s22  ;;  %p1085_p12 = scmp.lt.s32.totalorder %s1079_s22, %s1079_s22 }
  0x3b   :  { %881 = vmatpush1.bf16.msra.mxu0 %v880_v9  ;;  %v898_v18 = vpack.c.bf16 %v104_v16, %v88_v15  ;;  %v101_v20 = vld [vmem:[#allocation5 + $0x180] sm:$0xff]  ;;  %v103_v23 = vld [vmem:[#allocation5 + $0x190] sm:$0xff]  ;;  %v118_v24 = vld [vmem:[#allocation5 + $0x208] sm:$0xff] }
  0x3c   :  { %897 = vmatpush1.bf16.msra.mxu1 %v896_v13  ;;  %v884_v22 = vpack.c.bf16 %v101_v20, %v85_v19  ;;  %v134_v25 = vld [vmem:[#allocation5 + $0x288] sm:$0xff]  ;;  %883 = vmatprep.subr.bf16.mxu0 %v882_v17  ;;  %v900_v26 = vpack.c.bf16 %v103_v23, %v87_v21  ;;  %v120_v28 = vld [vmem:[#allocation5 + $0x218] sm:$0xff]  ;;  %v117_v30 = vld [vmem:[#allocation5 + $0x200] sm:$0xff]  ;;  %p1086_p13 = por %p1085_p12, %p1084_p11 }
  0x3d   :  { %899 = vmatprep.subr.bf16.mxu1 %v898_v18  ;;  %v886_v27 = vpack.c.bf16 %v134_v25, %v118_v24  ;;  %v136_v29 = vld [vmem:[#allocation5 + $0x298] sm:$0xff]  ;;  %v133_v32 = vld [vmem:[#allocation5 + $0x280] sm:$0xff]  ;;  %v119_v33 = vld [vmem:[#allocation5 + $0x210] sm:$0xff] }
  0x3e   :  { %v902_v31 = vpack.c.bf16 %v136_v29, %v120_v28  ;;  %v135_v34 = vld [vmem:[#allocation5 + $0x290] sm:$0xff]  ;;  %v888_v35 = vpack.c.bf16 %v133_v32, %v117_v30  ;;  %v150_v36 = vld [vmem:[#allocation5 + $0x308] sm:$0xff]  ;;  %v152_v38 = vld [vmem:[#allocation5 + $0x318] sm:$0xff]  ;;  %p1087_p0 = pnand %p1086_p13, %p1080_p10 }
  0x3f   :  { %885 = vmatpush1.bf16.msra.mxu0 %v884_v22  ;;  %v166_v37 = vld [vmem:[#allocation5 + $0x388] sm:$0xff]  ;;  %v904_v39 = vpack.c.bf16 %v135_v34, %v119_v33  ;;  %v168_v41 = vld [vmem:[#allocation5 + $0x398] sm:$0xff]  ;;  %v149_v42 = vld [vmem:[#allocation5 + $0x300] sm:$0xff] }
  0x40   :  { %901 = vmatpush1.bf16.msra.mxu1 %v900_v26  ;;  %887 = vmatprep.subr.bf16.mxu0 %v886_v27  ;;  %v890_v40 = vpack.c.bf16 %v166_v37, %v150_v36  ;;  %v165_v43 = vld [vmem:[#allocation5 + $0x380] sm:$0xff]  ;;  %v906_v44 = vpack.c.bf16 %v168_v41, %v152_v38  ;;  %v151_v45 = vld [vmem:[#allocation5 + $0x310] sm:$0xff]  ;;  %v58_v47 = vld [vmem:[#allocation5 + $0x28] sm:$0xff] }
  0x41   :  { %903 = vmatprep.subr.bf16.mxu1 %v902_v31  ;;  %v167_v46 = vld [vmem:[#allocation5 + $0x390] sm:$0xff]  ;;  %v74_v48 = vld [vmem:[#allocation5 + $0xa8] sm:$0xff]  ;;  %v60_v49 = vld [vmem:[#allocation5 + $0x38] sm:$0xff]  ;;  %v892_v50 = vpack.c.bf16 %v165_v43, %v149_v42 }
  0x42   :  { %v76_v51 = vld [vmem:[#allocation5 + $0xb8] sm:$0xff]  ;;  %v908_v52 = vpack.c.bf16 %v167_v46, %v151_v45  ;;  %v910_v53 = vpack.c.bf16 %v74_v48, %v58_v47  ;;  %v57_v54 = vld [vmem:[#allocation5 + $0x20] sm:$0xff]  ;;  %v59_v56 = vld [vmem:[#allocation5 + $0x30] sm:$0xff] }
  0x43   :  { %889 = vmatpush1.bf16.msra.mxu0 %v888_v35  ;;  %v73_v55 = vld [vmem:[#allocation5 + $0xa0] sm:$0xff]  ;;  %v926_v57 = vpack.c.bf16 %v76_v51, %v60_v49  ;;  %v75_v58 = vld [vmem:[#allocation5 + $0xb0] sm:$0xff]  ;;  %v90_v59 = vld [vmem:[#allocation5 + $0x128] sm:$0xff] }
  0x44   :  { %905 = vmatpush1.bf16.msra.mxu1 %v904_v39  ;;  %891 = vmatprep.subr.bf16.mxu0 %v890_v40  ;;  %v106_v60 = vld [vmem:[#allocation5 + $0x1a8] sm:$0xff]  ;;  %v92_v61 = vld [vmem:[#allocation5 + $0x138] sm:$0xff]  ;;  %v912_v1 = vpack.c.bf16 %v73_v55, %v57_v54  ;;  %v928_v2 = vpack.c.bf16 %v75_v58, %v59_v56  ;;  %v89_v4 = vld [vmem:[#allocation5 + $0x120] sm:$0xff] }
  0x45   :  { %907 = vmatprep.subr.bf16.mxu1 %v906_v44  ;;  %v108_v62 = vld [vmem:[#allocation5 + $0x1b8] sm:$0xff]  ;;  %v914_v3 = vpack.c.bf16 %v106_v60, %v90_v59  ;;  %v105_v5 = vld [vmem:[#allocation5 + $0x1a0] sm:$0xff]  ;;  %v91_v6 = vld [vmem:[#allocation5 + $0x130] sm:$0xff] }
  0x46   :  { %v1172_v63 = vld [vmem:[#allocation2] sm:$0xff]  ;;  %v930_v7 = vpack.c.bf16 %v108_v62, %v92_v61  ;;  %v107_v8 = vld [vmem:[#allocation5 + $0x1b0] sm:$0xff]  ;;  %v122_v9 = vld [vmem:[#allocation5 + $0x228] sm:$0xff]  ;;  %v916_v13 = vpack.c.bf16 %v105_v5, %v89_v4 }
  0x47   :  { %893 = vmatpush1.bf16.msra.mxu0 %v892_v50  ;;  %v138_v10 = vld [vmem:[#allocation5 + $0x2a8] sm:$0xff]  ;;  %v124_v11 = vld [vmem:[#allocation5 + $0x238] sm:$0xff]  ;;  %v932_v14 = vpack.c.bf16 %v107_v8, %v91_v6  ;;  %v121_v16 = vld [vmem:[#allocation5 + $0x220] sm:$0xff] }
  0x48   :  { %909 = vmatpush1.bf16.msra.mxu1 %v908_v52  ;;  %911 = vmatprep.subr.bf16.mxu0 %v910_v53  ;;  %v140_v12 = vld [vmem:[#allocation5 + $0x2b8] sm:$0xff]  ;;  %v918_v15 = vpack.c.bf16 %v138_v10, %v122_v9  ;;  %v137_v17 = vld [vmem:[#allocation5 + $0x2a0] sm:$0xff]  ;;  %v123_v18 = vld [vmem:[#allocation5 + $0x230] sm:$0xff] }
  0x49   :  { %927 = vmatprep.subr.bf16.mxu1 %v926_v57  ;;  %v934_v19 = vpack.c.bf16 %v140_v12, %v124_v11  ;;  %v139_v20 = vld [vmem:[#allocation5 + $0x2b0] sm:$0xff]  ;;  %v154_v21 = vld [vmem:[#allocation5 + $0x328] sm:$0xff]  ;;  %v156_v23 = vld [vmem:[#allocation5 + $0x338] sm:$0xff]  ;;  %v920_v25 = vpack.c.bf16 %v137_v17, %v121_v16 }
  0x4a   :  { %870 = vmatmul.mubr.msk.f32.vlgmr.msra.gmra.mrb[0].mxu0 %vm265_vm0, %v1172_v63  ;;  %v170_v22 = vld [vmem:[#allocation5 + $0x3a8] sm:$0xff]  ;;  %v172_v24 = vld [vmem:[#allocation5 + $0x3b8] sm:$0xff]  ;;  %v936_v26 = vpack.c.bf16 %v139_v20, %v123_v18  ;;  %v153_v28 = vld [vmem:[#allocation5 + $0x320] sm:$0xff] }
  0x4b   :  { %871 = vmatmul.mubr.msk.f32.vlgmr.msra.gmra.mrb[0].mxu1 %vm265_vm0, %v1172_v63  ;;  %913 = vmatpush1.bf16.msra.mxu0 %v912_v1  ;;  %v922_v27 = vpack.c.bf16 %v170_v22, %v154_v21  ;;  %v169_v29 = vld [vmem:[#allocation5 + $0x3a0] sm:$0xff]  ;;  %v155_v30 = vld [vmem:[#allocation5 + $0x330] sm:$0xff]  ;;  %v938_v31 = vpack.c.bf16 %v172_v24, %v156_v23  ;;  %v62_v33 = vld [vmem:[#allocation5 + $0x48] sm:$0xff] }
  0x4c   :  { %929 = vmatpush1.bf16.msra.mxu1 %v928_v2  ;;  %915 = vmatprep.subr.bf16.mxu0 %v914_v3  ;;  %v171_v32 = vld [vmem:[#allocation5 + $0x3b0] sm:$0xff]  ;;  %v78_v34 = vld [vmem:[#allocation5 + $0xc8] sm:$0xff]  ;;  %v64_v35 = vld [vmem:[#allocation5 + $0x58] sm:$0xff]  ;;  %v924_v37 = vpack.c.bf16 %v169_v29, %v153_v28 }
  0x4d   :  { %931 = vmatprep.subr.bf16.mxu1 %v930_v7  ;;  %475 = vmatprep.mubr.f32.mxu0 %v1112_v0  ;;  %v80_v36 = vld [vmem:[#allocation5 + $0xd8] sm:$0xff]  ;;  %v940_v38 = vpack.c.bf16 %v171_v32, %v155_v30  ;;  %v942_v39 = vpack.c.bf16 %v78_v34, %v62_v33  ;;  %v61_v40 = vld [vmem:[#allocation5 + $0x40] sm:$0xff]  ;;  %v63_v42 = vld [vmem:[#allocation5 + $0x50] sm:$0xff] }
  0x4e   :  { %546 = vmatprep.mubr.f32.mxu1 %v1112_v0  ;;  %v77_v41 = vld [vmem:[#allocation5 + $0xc0] sm:$0xff]  ;;  %v958_v43 = vpack.c.bf16 %v80_v36, %v64_v35  ;;  %v79_v44 = vld [vmem:[#allocation5 + $0xd0] sm:$0xff]  ;;  %v94_v45 = vld [vmem:[#allocation5 + $0x148] sm:$0xff] }
  0x4f   :  { %917 = vmatpush1.bf16.msra.mxu0 %v916_v13  ;;  %v110_v46 = vld [vmem:[#allocation5 + $0x1c8] sm:$0xff]  ;;  %v96_v47 = vld [vmem:[#allocation5 + $0x158] sm:$0xff]  ;;  %v944_v49 = vpack.c.bf16 %v77_v41, %v61_v40  ;;  %v960_v50 = vpack.c.bf16 %v79_v44, %v63_v42  ;;  %v93_v52 = vld [vmem:[#allocation5 + $0x140] sm:$0xff] }
  0x50   :  { %933 = vmatpush1.bf16.msra.mxu1 %v932_v14  ;;  %919 = vmatprep.subr.bf16.mxu0 %v918_v15  ;;  %v112_v48 = vld [vmem:[#allocation5 + $0x1d8] sm:$0xff]  ;;  %v946_v51 = vpack.c.bf16 %v110_v46, %v94_v45  ;;  %v109_v53 = vld [vmem:[#allocation5 + $0x1c0] sm:$0xff]  ;;  %v95_v54 = vld [vmem:[#allocation5 + $0x150] sm:$0xff] }
  0x51   :  { %935 = vmatprep.subr.bf16.mxu1 %v934_v19  ;;  %v962_v55 = vpack.c.bf16 %v112_v48, %v96_v47  ;;  %v111_v56 = vld [vmem:[#allocation5 + $0x1d0] sm:$0xff]  ;;  %v126_v57 = vld [vmem:[#allocation5 + $0x248] sm:$0xff]  ;;  %v128_v59 = vld [vmem:[#allocation5 + $0x258] sm:$0xff]  ;;  %v948_v61 = vpack.c.bf16 %v109_v53, %v93_v52 }
  0x52   :  { %v142_v58 = vld [vmem:[#allocation5 + $0x2c8] sm:$0xff]  ;;  %v144_v60 = vld [vmem:[#allocation5 + $0x2d8] sm:$0xff]  ;;  %v964_v62 = vpack.c.bf16 %v111_v56, %v95_v54  ;;  %v125_v2 = vld [vmem:[#allocation5 + $0x240] sm:$0xff] }
  0x53   :  { %921 = vmatpush1.bf16.msra.mxu0 %v920_v25  ;;  %v950_v1 = vpack.c.bf16 %v142_v58, %v126_v57  ;;  %v141_v3 = vld [vmem:[#allocation5 + $0x2c0] sm:$0xff]  ;;  %v127_v4 = vld [vmem:[#allocation5 + $0x250] sm:$0xff]  ;;  %v966_v5 = vpack.c.bf16 %v144_v60, %v128_v59  ;;  %v158_v7 = vld [vmem:[#allocation5 + $0x348] sm:$0xff] }
  0x54   :  { %937 = vmatpush1.bf16.msra.mxu1 %v936_v26  ;;  %923 = vmatprep.subr.bf16.mxu0 %v922_v27  ;;  %v143_v6 = vld [vmem:[#allocation5 + $0x2d0] sm:$0xff]  ;;  %v174_v8 = vld [vmem:[#allocation5 + $0x3c8] sm:$0xff]  ;;  %v160_v9 = vld [vmem:[#allocation5 + $0x358] sm:$0xff]  ;;  %v952_v11 = vpack.c.bf16 %v141_v3, %v125_v2 }
  0x55   :  { %939 = vmatprep.subr.bf16.mxu1 %v938_v31  ;;  %v176_v10 = vld [vmem:[#allocation5 + $0x3d8] sm:$0xff]  ;;  %v968_v12 = vpack.c.bf16 %v143_v6, %v127_v4  ;;  %v954_v13 = vpack.c.bf16 %v174_v8, %v158_v7  ;;  %v157_v14 = vld [vmem:[#allocation5 + $0x340] sm:$0xff]  ;;  %v159_v16 = vld [vmem:[#allocation5 + $0x350] sm:$0xff] }
  0x56   :  { %v173_v15 = vld [vmem:[#allocation5 + $0x3c0] sm:$0xff]  ;;  %v970_v17 = vpack.c.bf16 %v176_v10, %v160_v9  ;;  %v175_v18 = vld [vmem:[#allocation5 + $0x3d0] sm:$0xff]  ;;  %v66_v19 = vld [vmem:[#allocation5 + $0x68] sm:$0xff] }
  0x57   :  { %925 = vmatpush1.bf16.msra.mxu0 %v924_v37  ;;  %v82_v20 = vld [vmem:[#allocation5 + $0xe8] sm:$0xff]  ;;  %v68_v21 = vld [vmem:[#allocation5 + $0x78] sm:$0xff]  ;;  %v956_v23 = vpack.c.bf16 %v173_v15, %v157_v14  ;;  %v972_v24 = vpack.c.bf16 %v175_v18, %v159_v16  ;;  %v65_v26 = vld [vmem:[#allocation5 + $0x60] sm:$0xff] }
  0x58   :  { %941 = vmatpush1.bf16.msra.mxu1 %v940_v38  ;;  %943 = vmatprep.subr.bf16.mxu0 %v942_v39  ;;  %v84_v22 = vld [vmem:[#allocation5 + $0xf8] sm:$0xff]  ;;  %v974_v25 = vpack.c.bf16 %v82_v20, %v66_v19  ;;  %v81_v27 = vld [vmem:[#allocation5 + $0xe0] sm:$0xff]  ;;  %v67_v28 = vld [vmem:[#allocation5 + $0x70] sm:$0xff] }
  0x59   :  { %959 = vmatprep.subr.bf16.mxu1 %v958_v43  ;;  %v990_v29 = vpack.c.bf16 %v84_v22, %v68_v21  ;;  %v83_v30 = vld [vmem:[#allocation5 + $0xf0] sm:$0xff]  ;;  %v98_v31 = vld [vmem:[#allocation5 + $0x168] sm:$0xff]  ;;  %v100_v33 = vld [vmem:[#allocation5 + $0x178] sm:$0xff]  ;;  %v976_v35 = vpack.c.bf16 %v81_v27, %v65_v26 }
  0x5a   :  { %872 = vmatmul.mubr.msk.f32.vlgmr.msra.gmra.mrb[2].mxu0 %vm265_vm0, %v1172_v63  ;;  %v114_v32 = vld [vmem:[#allocation5 + $0x1e8] sm:$0xff]  ;;  %v116_v34 = vld [vmem:[#allocation5 + $0x1f8] sm:$0xff]  ;;  %v992_v36 = vpack.c.bf16 %v83_v30, %v67_v28  ;;  %v97_v38 = vld [vmem:[#allocation5 + $0x160] sm:$0xff] }
  0x5b   :  { %873 = vmatmul.mubr.msk.f32.vlgmr.msra.gmra.mrb[2].mxu1 %vm265_vm0, %v1172_v63  ;;  %945 = vmatpush1.bf16.msra.mxu0 %v944_v49  ;;  %v978_v37 = vpack.c.bf16 %v114_v32, %v98_v31  ;;  %v113_v39 = vld [vmem:[#allocation5 + $0x1e0] sm:$0xff]  ;;  %v99_v40 = vld [vmem:[#allocation5 + $0x170] sm:$0xff]  ;;  %v994_v41 = vpack.c.bf16 %v116_v34, %v100_v33  ;;  %v130_v43 = vld [vmem:[#allocation5 + $0x268] sm:$0xff] }
  0x5c   :  { %961 = vmatpush1.bf16.msra.mxu1 %v960_v50  ;;  %947 = vmatprep.subr.bf16.mxu0 %v946_v51  ;;  %v115_v42 = vld [vmem:[#allocation5 + $0x1f0] sm:$0xff]  ;;  %v146_v44 = vld [vmem:[#allocation5 + $0x2e8] sm:$0xff]  ;;  %v132_v45 = vld [vmem:[#allocation5 + $0x278] sm:$0xff]  ;;  %v980_v47 = vpack.c.bf16 %v113_v39, %v97_v38 }
  0x5d   :  { %963 = vmatprep.subr.bf16.mxu1 %v962_v55  ;;  %617 = vmatprep.mubr.f32.mxu0 %v1112_v0  ;;  %v148_v46 = vld [vmem:[#allocation5 + $0x2f8] sm:$0xff]  ;;  %v996_v48 = vpack.c.bf16 %v115_v42, %v99_v40  ;;  %v982_v49 = vpack.c.bf16 %v146_v44, %v130_v43  ;;  %v129_v50 = vld [vmem:[#allocation5 + $0x260] sm:$0xff]  ;;  %v131_v52 = vld [vmem:[#allocation5 + $0x270] sm:$0xff] }
  0x5e   :  { %688 = vmatprep.mubr.f32.mxu1 %v1112_v0  ;;  %v145_v51 = vld [vmem:[#allocation5 + $0x2e0] sm:$0xff]  ;;  %v998_v53 = vpack.c.bf16 %v148_v46, %v132_v45  ;;  %v147_v54 = vld [vmem:[#allocation5 + $0x2f0] sm:$0xff]  ;;  %v162_v55 = vld [vmem:[#allocation5 + $0x368] sm:$0xff] }
  0x5f   :  { %949 = vmatpush1.bf16.msra.mxu0 %v948_v61  ;;  %v178_v56 = vld [vmem:[#allocation5 + $0x3e8] sm:$0xff]  ;;  %v164_v57 = vld [vmem:[#allocation5 + $0x378] sm:$0xff]  ;;  %v984_v59 = vpack.c.bf16 %v145_v51, %v129_v50  ;;  %v1000_v60 = vpack.c.bf16 %v147_v54, %v131_v52  ;;  %v163_v3 = vld [vmem:[#allocation5 + $0x370] sm:$0xff] }
  0x60   :  { %965 = vmatpush1.bf16.msra.mxu1 %v964_v62  ;;  %951 = vmatprep.subr.bf16.mxu0 %v950_v1  ;;  %v180_v58 = vld [vmem:[#allocation5 + $0x3f8] sm:$0xff]  ;;  %v986_v61 = vpack.c.bf16 %v178_v56, %v162_v55  ;;  %v161_v62 = vld [vmem:[#allocation5 + $0x360] sm:$0xff]  ;;  %v179_v4 = vld [vmem:[#allocation5 + $0x3f0] sm:$0xff] }
  0x61   :  { %967 = vmatprep.subr.bf16.mxu1 %v966_v5  ;;  %v177_v1 = vld [vmem:[#allocation5 + $0x3e0] sm:$0xff]  ;;  %v1002_v2 = vpack.c.bf16 %v180_v58, %v164_v57  ;;  %v1004_v6 = vpack.c.bf16 %v179_v4, %v163_v3  ;;  %v182_v40 = vld [vmem:[#allocation7 + $0x8] sm:$0xff] }
  0x62   :  { %v988_v5 = vpack.c.bf16 %v177_v1, %v161_v62  ;;  %v181_v9 = vld [vmem:[#allocation7] sm:$0xff] }
  0x63   :  { %953 = vmatpush1.bf16.msra.mxu0 %v952_v11 }
  0x64   :  { %969 = vmatpush1.bf16.msra.mxu1 %v968_v12  ;;  %955 = vmatprep.subr.bf16.mxu0 %v954_v13 }
  0x65   :  { %971 = vmatprep.subr.bf16.mxu1 %v970_v17 }
  0x67   :  { %957 = vmatpush1.bf16.msra.mxu0 %v956_v23 }
  0x68   :  { %973 = vmatpush1.bf16.msra.mxu1 %v972_v24  ;;  %975 = vmatprep.subr.bf16.mxu0 %v974_v25 }
  0x69   :  { %991 = vmatprep.subr.bf16.mxu1 %v990_v29 }
  0x6a   :  { %874 = vmatmul.mubr.msk.f32.vlgmr.msra.gmra.mrb[4].mxu0 %vm265_vm0, %v1172_v63 }
  0x6b   :  { %875 = vmatmul.mubr.msk.f32.vlgmr.msra.gmra.mrb[4].mxu1 %vm265_vm0, %v1172_v63  ;;  %977 = vmatpush1.bf16.msra.mxu0 %v976_v35 }
  0x6c   :  { %993 = vmatpush1.bf16.msra.mxu1 %v992_v36  ;;  %979 = vmatprep.subr.bf16.mxu0 %v978_v37 }
  0x6d   :  { %995 = vmatprep.subr.bf16.mxu1 %v994_v41  ;;  %759 = vmatprep.mubr.f32.mxu0 %v1112_v0 }
  0x6e   :  { %830 = vmatprep.mubr.f32.mxu1 %v1112_v0  ;;  %v185_v0 = vlaneseq }
  0x6f   :  { %981 = vmatpush1.bf16.msra.mxu0 %v980_v47 }
  0x70   :  { %997 = vmatpush1.bf16.msra.mxu1 %v996_v48  ;;  %983 = vmatprep.subr.bf16.mxu0 %v982_v49  ;;  %v1196_v7 = vshrl.u32 %v185_v0, 7 }
  0x71   :  { %999 = vmatprep.subr.bf16.mxu1 %v998_v53 }
  0x72   :  { %v187_v8 = vsub.s32 0, %v1196_v7  ;;  %v195_v10 = vsub.s32 2, %v1196_v7  ;;  %v191_v11 = vsub.s32 1, %v1196_v7  ;;  %v199_v12 = vsub.s32 3, %v1196_v7 }
  0x73   :  { %985 = vmatpush1.bf16.msra.mxu0 %v984_v59  ;;  %v203_v24 = vsub.s32 4, %v1196_v7  ;;  %v211_v25 = vsub.s32 6, %v1196_v7  ;;  %v207_v26 = vsub.s32 5, %v1196_v7  ;;  %v215_v27 = vsub.s32 7, %v1196_v7 }
  0x74   :  { %1001 = vmatpush1.bf16.msra.mxu1 %v1000_v60  ;;  %987 = vmatprep.subr.bf16.mxu0 %v986_v61  ;;  %v188_v13 = vrot.slane %v181_v9, %v187_v8  ;;  %v196_v14 = vrot.slane %v181_v9, %v195_v10  ;;  %v192_v15 = vrot.slane %v181_v9, %v191_v11 }
  0x75   :  { %1003 = vmatprep.subr.bf16.mxu1 %v1002_v2  ;;  %v200_v16 = vrot.slane %v181_v9, %v199_v12  ;;  %v204_v28 = vrot.slane %v181_v9, %v203_v24  ;;  %v212_v29 = vrot.slane %v181_v9, %v211_v25  ;;  %v208_v30 = vrot.slane %v181_v9, %v207_v26 }
  0x76   :  { %v216_v31 = vrot.slane %v181_v9, %v215_v27  ;;  %v220_v41 = vrot.slane %v182_v40, %v187_v8  ;;  %v228_v42 = vrot.slane %v182_v40, %v195_v10  ;;  %v224_v43 = vrot.slane %v182_v40, %v191_v11 }
  0x77   :  { %989 = vmatpush1.bf16.msra.mxu0 %v988_v5  ;;  %v232_v44 = vrot.slane %v182_v40, %v199_v12  ;;  %v236_v53 = vrot.slane %v182_v40, %v203_v24  ;;  %v244_v54 = vrot.slane %v182_v40, %v211_v25  ;;  %v240_v55 = vrot.slane %v182_v40, %v207_v26 }
  0x78   :  { %1005 = vmatpush1.bf16.msra.mxu1 %v1004_v6  ;;  %v248_v56 = vrot.slane %v182_v40, %v215_v27 }
  0x7a   :  { %876 = vmatmul.mubr.msk.f32.vlgmr.msra.gmra.mrb[6].mxu0 %vm265_vm0, %v1172_v63 }
  0x7b   :  { %877 = vmatmul.mubr.msk.f32.vlgmr.msra.gmra.mrb[6].mxu1 %vm265_vm0, %v1172_v63 }
 0x11d   :  { %v335_v17 = vpop.f32.mrb[0].mxu0 }
 0x11e   :  { %v336_v18 = vadd.f32 %v335_v17, %v188_v13  ;;  %v406_v19 = vpop.f32.mrb[0].mxu1  ;;  %v337_v63 = vpop.f32.mrb[1].mxu0 }
 0x11f   :  { %v407_v20 = vadd.f32 %v406_v19, %v196_v14  ;;  %v338_v21 = vadd.f32 %v337_v63, %v192_v15  ;;  %v408_v22 = vpop.f32.mrb[1].mxu1 }
 0x120   :  { %837 = vst [vmem:[#allocation8] sm:$0xff] %v336_v18  ;;  %v409_v23 = vadd.f32 %v408_v22, %v200_v16 }
 0x121   :  { %839 = vst [vmem:[#allocation8 + $0x10] sm:$0xff] %v407_v20  ;;  %838 = vst [vmem:[#allocation8 + $0x8] sm:$0xff] %v338_v21 }
 0x122   :  { %840 = vst [vmem:[#allocation8 + $0x18] sm:$0xff] %v409_v23 }
 0x12d   :  { %v477_v32 = vpop.f32.mrb[2].mxu0 }
 0x12e   :  { %v478_v33 = vadd.f32 %v477_v32, %v204_v28  ;;  %v548_v34 = vpop.f32.mrb[2].mxu1  ;;  %v479_v35 = vpop.f32.mrb[3].mxu0 }
 0x12f   :  { %v549_v36 = vadd.f32 %v548_v34, %v212_v29  ;;  %v480_v37 = vadd.f32 %v479_v35, %v208_v30  ;;  %v550_v38 = vpop.f32.mrb[3].mxu1 }
 0x130   :  { %841 = vst [vmem:[#allocation8 + $0x20] sm:$0xff] %v478_v33  ;;  %v551_v39 = vadd.f32 %v550_v38, %v216_v31 }
 0x131   :  { %843 = vst [vmem:[#allocation8 + $0x30] sm:$0xff] %v549_v36  ;;  %842 = vst [vmem:[#allocation8 + $0x28] sm:$0xff] %v480_v37 }
 0x132   :  { %844 = vst [vmem:[#allocation8 + $0x38] sm:$0xff] %v551_v39 }
 0x13d   :  { %v619_v45 = vpop.f32.mrb[4].mxu0 }
 0x13e   :  { %v620_v46 = vadd.f32 %v619_v45, %v220_v41  ;;  %v690_v47 = vpop.f32.mrb[4].mxu1  ;;  %v621_v48 = vpop.f32.mrb[5].mxu0 }
 0x13f   :  { %v691_v49 = vadd.f32 %v690_v47, %v228_v42  ;;  %v622_v50 = vadd.f32 %v621_v48, %v224_v43  ;;  %v692_v51 = vpop.f32.mrb[5].mxu1 }
 0x140   :  { %845 = vst [vmem:[#allocation8 + $0x40] sm:$0xff] %v620_v46  ;;  %v693_v52 = vadd.f32 %v692_v51, %v232_v44 }
 0x141   :  { %847 = vst [vmem:[#allocation8 + $0x50] sm:$0xff] %v691_v49  ;;  %846 = vst [vmem:[#allocation8 + $0x48] sm:$0xff] %v622_v50 }
 0x142   :  { %848 = vst [vmem:[#allocation8 + $0x58] sm:$0xff] %v693_v52 }
 0x14d   :  { %v761_v57 = vpop.f32.mrb[6].mxu0 }
 0x14e   :  { %v762_v58 = vadd.f32 %v761_v57, %v236_v53  ;;  %v832_v59 = vpop.f32.mrb[6].mxu1  ;;  %v763_v60 = vpop.f32.mrb[7].mxu0 }
 0x14f   :  { %v833_v61 = vadd.f32 %v832_v59, %v244_v54  ;;  %v764_v62 = vadd.f32 %v763_v60, %v240_v55  ;;  %v834_v1 = vpop.f32.mrb[7].mxu1 }
 0x150   :  { %849 = vst [vmem:[#allocation8 + $0x60] sm:$0xff] %v762_v58  ;;  %v835_v2 = vadd.f32 %v834_v1, %v248_v56 }
 0x151   :  { %851 = vst [vmem:[#allocation8 + $0x70] sm:$0xff] %v833_v61  ;;  %850 = vst [vmem:[#allocation8 + $0x68] sm:$0xff] %v764_v62 }
 0x152   :  { %853 = vst.msk [vmem:[#allocation8 + $0x78] sm:$0xff] %vm852_vm1, %v835_v2 }
 0x153   :  { %1090 = shalt.err (!%p1087_p0)
}
 0x154   :  { %s1091_s25 = scalar_lea.hbm %s1221_s3, 2048 }
 0x155   :  { %p1092_p1 = scmp.ne.s32.totalorder %s1221_s3, %s1091_s25  ;;  %p1095_p2 = scmp.lt.u32.totalorder %s1091_s25, %s1221_s3 }
 0x157   :  { %p1097_p3 = pnand %p1095_p2, %p1092_p1 }
 0x159   :  { %1100 = shalt.err (!%p1097_p3)
}
 0x15a   :  { %863 = dma.vmem_to_hbm [thread:$0]  %s861_s21, 2048, %s1221_s3, [#allocation4]  }
 0x15b   :  { %1105 = dma.done.wait [#allocation4], 2048  }
 0x15c   :  { %1106 = vsyncadd [#allocation4], 4294965248 }
 0x15d   :  { %867 = vsyncpa [#allocation3], 1 }
 0x15e   :  { %868 = vsyncpa [#allocation6], 1 }
 0x15f   :  { %869 = vsyncpa [#allocation4], 1 }

</bundles_post_ra>
